<compile_context>
chip_gen: v7x
topology: tpu7x:2x2x1
jax: 0.10.0
libtpu: 0.0.40
codegen_flags: <defaults>
</compile_context>

<pallas_src>
import math
import functools

import jax
import jax.numpy as jnp
from jax import lax
from jax.experimental import pallas as pl
from jax.experimental.pallas import tpu as pltpu

# Make the plain-JAX reference and the in-kernel f32 dots numerically comparable.
jax.config.update("jax_default_matmul_precision", "highest")


# ----------------------------------------------------------------------------
# Kernel 1: fused QKV projection  (x @ [Wq|Wk|Wv] + [bq|bk|bv])
# ----------------------------------------------------------------------------
def _qkv_kernel(x_ref, w_ref, b_ref, o_ref):
    x = x_ref[0]                                                   # (T, D)
    o = jnp.dot(x, w_ref[...], preferred_element_type=jnp.float32)  # (T, 3D)
    o_ref[0] = o + b_ref[...]


def qkv_projection(x, w_qkv, b_qkv):
    B, T, D = x.shape
    D3 = w_qkv.shape[1]
    return pl.pallas_call(
        _qkv_kernel,
        out_shape=jax.ShapeDtypeStruct((B, T, D3), jnp.float32),
        grid_spec=pltpu.PrefetchScalarGridSpec(
            num_scalar_prefetch=0,
            grid=(B,),
            in_specs=[
                pl.BlockSpec((1, T, D), lambda b: (b, 0, 0)),
                pl.BlockSpec((D, D3), lambda b: (0, 0)),   # VMEM-resident weight
                pl.BlockSpec((1, D3), lambda b: (0, 0)),   # lane-dense bias
            ],
            out_specs=pl.BlockSpec((1, T, D3), lambda b: (b, 0, 0)),
        ),
        compiler_params=pltpu.CompilerParams(dimension_semantics=("parallel",)),
    )(x, w_qkv, b_qkv)


# ----------------------------------------------------------------------------
# Kernel 2: scaled dot-product attention (all heads of one batch element / step)
# ----------------------------------------------------------------------------
def _attn_kernel(q_ref, k_ref, v_ref, attn_ref, ctx_ref, *, scale):
    q = q_ref[...]                                                 # (H, T, d)
    k = k_ref[...]
    v = v_ref[...]
    s = jnp.einsum("htd,hsd->hts", q, k,
                   preferred_element_type=jnp.float32) * scale     # (H, T, T)
    m = jnp.max(s, axis=-1, keepdims=True)
    p = jnp.exp(s - m)
    l = jnp.sum(p, axis=-1, keepdims=True)
    attn = p / l                                                   # softmax(dim=-1)
    # TODO(synk): attn_dropout is eval-mode identity; training dropout not reproduced.
    ctx = jnp.einsum("hts,hsd->htd", attn, v,
                     preferred_element_type=jnp.float32)           # (H, T, d)
    attn_ref[...] = attn
    ctx_ref[...] = ctx


def attention(q, k, v, *, num_heads, scale):
    BH, T, d = q.shape
    H = num_heads
    B = BH // H
    kernel = functools.partial(_attn_kernel, scale=scale)
    return pl.pallas_call(
        kernel,
        out_shape=(
            jax.ShapeDtypeStruct((BH, T, T), jnp.float32),
            jax.ShapeDtypeStruct((BH, T, d), jnp.float32),
        ),
        grid_spec=pltpu.PrefetchScalarGridSpec(
            num_scalar_prefetch=0,
            grid=(B,),
            in_specs=[pl.BlockSpec((H, T, d), lambda b: (b, 0, 0))] * 3,
            out_specs=[
                pl.BlockSpec((H, T, T), lambda b: (b, 0, 0)),
                pl.BlockSpec((H, T, d), lambda b: (b, 0, 0)),
            ],
        ),
        compiler_params=pltpu.CompilerParams(dimension_semantics=("parallel",)),
    )(q, k, v)


# ----------------------------------------------------------------------------
# Kernel 3: output projection + residual + LN1 + FFN (GELU) + residual + LN2
# ----------------------------------------------------------------------------
_GELU_C = math.sqrt(2.0 / math.pi)


def _layer_norm(x, w, b, eps=1e-5):
    mu = jnp.mean(x, axis=-1, keepdims=True)
    xc = x - mu
    var = jnp.mean(xc * xc, axis=-1, keepdims=True)
    return xc * lax.rsqrt(var + eps) * w + b


def _post_kernel(ctx_ref, x_ref, wo_ref, bo_ref, ln1w_ref, ln1b_ref,
                 w1_ref, b1_ref, w2_ref, b2_ref, ln2w_ref, ln2b_ref, o_ref):
    c = ctx_ref[0]                                                 # (T, D)
    x = x_ref[0]                                                   # (T, D)
    # linear_final + residual + LayerNorm   (dropout == identity in eval mode)
    o = jnp.dot(c, wo_ref[...], preferred_element_type=jnp.float32) + bo_ref[...]
    y1 = _layer_norm(x + o, ln1w_ref[...], ln1b_ref[...])
    # position-wise FFN: Conv1d(k=1) == matmul over the feature dim
    h = jnp.dot(y1, w1_ref[...], preferred_element_type=jnp.float32) + b1_ref[...]
    g = 0.5 * h * (1.0 + jnp.tanh(_GELU_C * (h + 0.044715 * h * h * h)))   # GELU
    f = jnp.dot(g, w2_ref[...], preferred_element_type=jnp.float32) + b2_ref[...]
    o_ref[0] = _layer_norm(y1 + f, ln2w_ref[...], ln2b_ref[...])


def post_attention(context, x, p):
    B, T, D = x.shape
    F = p["w1"].shape[1]
    cst2 = lambda b: (0, 0)
    return pl.pallas_call(
        _post_kernel,
        out_shape=jax.ShapeDtypeStruct((B, T, D), jnp.float32),
        grid_spec=pltpu.PrefetchScalarGridSpec(
            num_scalar_prefetch=0,
            grid=(B,),
            in_specs=[
                pl.BlockSpec((1, T, D), lambda b: (b, 0, 0)),   # context
                pl.BlockSpec((1, T, D), lambda b: (b, 0, 0)),   # residual input
                pl.BlockSpec((D, D), cst2),                     # Wo
                pl.BlockSpec((1, D), cst2),                     # bo
                pl.BlockSpec((1, D), cst2),                     # ln1 weight
                pl.BlockSpec((1, D), cst2),                     # ln1 bias
                pl.BlockSpec((D, F), cst2),                     # W1 (ffn in)
                pl.BlockSpec((1, F), cst2),                     # b1
                pl.BlockSpec((F, D), cst2),                     # W2 (ffn out)
                pl.BlockSpec((1, D), cst2),                     # b2
                pl.BlockSpec((1, D), cst2),                     # ln2 weight
                pl.BlockSpec((1, D), cst2),                     # ln2 bias
            ],
            out_specs=pl.BlockSpec((1, T, D), lambda b: (b, 0, 0)),
        ),
        compiler_params=pltpu.CompilerParams(dimension_semantics=("parallel",)),
    )(context, x, p["wo"], p["bo"], p["ln1_w"], p["ln1_b"],
      p["w1"], p["b1"], p["w2"], p["b2"], p["ln2_w"], p["ln2_b"])


# ----------------------------------------------------------------------------
# Full EncoderLayer forward
# ----------------------------------------------------------------------------
def encoder_layer(x, params, *, num_heads):
    B, T, D = x.shape
    H = num_heads
    d = D // H
    assert d // H > 0, "scale = (dim_per_head // num_heads)**-0.5 must be finite"

    w_qkv = jnp.concatenate([params["wq"], params["wk"], params["wv"]], axis=1)
    b_qkv = jnp.concatenate([params["bq"], params["bk"], params["bv"]], axis=1)

    qkv = qkv_projection(x, w_qkv, b_qkv)                      # (B, T, 3D)

    # torch: q/k/v.view(B*H, -1, d)   (straight row-major reinterpretation)
    q = qkv[:, :, 0 * D:1 * D].reshape(B * H, T, d)
    k = qkv[:, :, 1 * D:2 * D].reshape(B * H, T, d)
    v = qkv[:, :, 2 * D:3 * D].reshape(B * H, T, d)

    scale = float(d // H) ** (-0.5)
    attn, ctx = attention(q, k, v, num_heads=H, scale=scale)   # (B*H,T,T), (B*H,T,d)

    # torch: context.view(B, -1, d*H)
    context = ctx.reshape(B, T, D)

    # TODO(synk): attn_mask handling omitted (module is called with attn_mask=None).
    out = post_attention(context, x, params)                   # (B, T, D)
    return out, attn


# ----------------------------------------------------------------------------
# Plain-JAX reference mirroring the PyTorch forward (eval mode, no mask)
# ----------------------------------------------------------------------------
def reference(x, p, *, num_heads):
    B, T, D = x.shape
    H = num_heads
    d = D // H
    q = x @ p["wq"] + p["bq"]
    k = x @ p["wk"] + p["bk"]
    v = x @ p["wv"] + p["bv"]
    q = q.reshape(B * H, -1, d)
    k = k.reshape(B * H, -1, d)
    v = v.reshape(B * H, -1, d)
    scale = float(d // H) ** (-0.5)
    attn = jnp.einsum("bij,bkj->bik", q, k) * scale
    attn = jax.nn.softmax(attn, axis=2)
    ctx = jnp.einsum("bij,bjk->bik", attn, v)
    ctx = ctx.reshape(B, -1, d * H)
    o = ctx @ p["wo"] + p["bo"]

    def ln(z, w, b, eps=1e-5):
        mu = jnp.mean(z, axis=-1, keepdims=True)
        var = jnp.mean((z - mu) ** 2, axis=-1, keepdims=True)
        return (z - mu) / jnp.sqrt(var + eps) * w + b

    y1 = ln(x + o, p["ln1_w"], p["ln1_b"])
    h = y1 @ p["w1"] + p["b1"]
    g = 0.5 * h * (1.0 + jnp.tanh(_GELU_C * (h + 0.044715 * h ** 3)))
    f = g @ p["w2"] + p["b2"]
    y2 = ln(y1 + f, p["ln2_w"], p["ln2_b"])
    return y2, attn


if __name__ == "__main__":
    B, T, D, H, F = 2, 8, 64, 4, 128   # batch, seq, model_dim, heads, ffn_dim

    key = jax.random.PRNGKey(0)
    ks = jax.random.split(key, 16)

    def rnd(k, shape, s=0.1):
        return s * jax.random.normal(k, shape, dtype=jnp.float32)

    x = jax.random.normal(ks[0], (B, T, D), dtype=jnp.float32)
    params = dict(
        wq=rnd(ks[1], (D, D)), bq=rnd(ks[2], (1, D)),
        wk=rnd(ks[3], (D, D)), bk=rnd(ks[4], (1, D)),
        wv=rnd(ks[5], (D, D)), bv=rnd(ks[6], (1, D)),
        wo=rnd(ks[7], (D, D)), bo=rnd(ks[8], (1, D)),
        ln1_w=1.0 + rnd(ks[9], (1, D)), ln1_b=rnd(ks[10], (1, D)),
        w1=rnd(ks[11], (D, F)), b1=rnd(ks[12], (1, F)),
        w2=rnd(ks[13], (F, D)), b2=rnd(ks[14], (1, D)),
        ln2_w=1.0 + rnd(ks[15], (1, D)), ln2_b=jnp.zeros((1, D), jnp.float32),
    )

    out, attn = encoder_layer(x, params, num_heads=H)
    out, attn = jax.block_until_ready((out, attn))

    ref_out, ref_attn = reference(x, params, num_heads=H)

    assert out.shape == (B, T, D), out.shape
    assert attn.shape == (B * H, T, T), attn.shape
    assert jnp.allclose(out, ref_out, atol=1e-4, rtol=1e-3), "output mismatch vs reference"
    assert jnp.allclose(attn, ref_attn, atol=1e-4, rtol=1e-3), "attention mismatch vs reference"

    print("KERNEL_OK")
</pallas_src>

<mosaic_0001>
module attributes {stable_mosaic.version = 11 : i64} {
  func.func @_qkv_kernel(%arg0: i32, %arg1: memref<1x8x64xf32, #tpu.memory_space<vmem>>, %arg2: memref<64x192xf32, #tpu.memory_space<vmem>>, %arg3: memref<1x192xf32, #tpu.memory_space<vmem>>, %arg4: memref<1x8x192xf32, #tpu.memory_space<vmem>>) attributes {dimension_semantics = [#tpu.dimension_semantics<parallel>], iteration_bounds = array<i64: 2>, scalar_prefetch = 0 : i64, scratch_operands = 0 : i64, tpu.core_type = #tpu.core_type<tc>, window_params = [{transform_indices = @transform_0, window_bounds = array<i64: 1, 8, 64>}, {pipeline_mode = #tpu.pipeline_mode<synchronous>, transform_indices = @transform_1, window_bounds = array<i64: 64, 192>}, {pipeline_mode = #tpu.pipeline_mode<synchronous>, transform_indices = @transform_2, window_bounds = array<i64: 1, 192>}, {transform_indices = @transform_3, window_bounds = array<i64: 1, 8, 192>}]} {
    %c0 = arith.constant 0 : index
    %c0_0 = arith.constant 0 : index
    %c0_1 = arith.constant 0 : index
    %0 = vector.load %arg1[%c0, %c0_0, %c0_1] : memref<1x8x64xf32, #tpu.memory_space<vmem>>, vector<1x8x64xf32>
    %1 = vector.shape_cast %0 : vector<1x8x64xf32> to vector<8x64xf32>
    %c0_2 = arith.constant 0 : index
    %c0_3 = arith.constant 0 : index
    %2 = vector.load %arg2[%c0_2, %c0_3] : memref<64x192xf32, #tpu.memory_space<vmem>>, vector<64x192xf32>
    %cst = arith.constant dense<0.000000e+00> : vector<8x192xf32>
    %3 = tpu.matmul %1, %2, %cst {dimension_numbers = #tpu.dot_dimension_numbers<[1], [0], [0], [1], [0, 0, 1, 1], [], []>, precision = #tpu.contract_precision<fp32>} : vector<8x64xf32>, vector<64x192xf32>, vector<8x192xf32> -> vector<8x192xf32>
    %c0_4 = arith.constant 0 : index
    %c0_5 = arith.constant 0 : index
    %4 = vector.load %arg3[%c0_4, %c0_5] : memref<1x192xf32, #tpu.memory_space<vmem>>, vector<1x192xf32>
    %5 = vector.broadcast %4 : vector<1x192xf32> to vector<8x192xf32>
    %6 = arith.addf %3, %5 : vector<8x192xf32>
    %c0_6 = arith.constant 0 : index
    %c0_7 = arith.constant 0 : index
    %c0_8 = arith.constant 0 : index
    %7 = vector.load %arg4[%c0_6, %c0_7, %c0_8] : memref<1x8x192xf32, #tpu.memory_space<vmem>>, vector<1x8x192xf32>
    %8 = vector.shape_cast %7 : vector<1x8x192xf32> to vector<8x192xf32>
    %9 = vector.shape_cast %6 : vector<8x192xf32> to vector<1x8x192xf32>
    tpu.vector_store %arg4[%c0_6, %c0_7, %c0_8], %9 {strides = array<i32>} : memref<1x8x192xf32, #tpu.memory_space<vmem>>, vector<1x8x192xf32>,
    return
  }
  func.func @transform_0(%arg0: i32) -> (i32, i32, i32) {
    %c0_i32 = arith.constant 0 : i32
    %c0_i32_0 = arith.constant 0 : i32
    %c0_i32_1 = arith.constant 0 : i32
    return %arg0, %c0_i32, %c0_i32_0 : i32, i32, i32
  }
  func.func @transform_1(%arg0: i32) -> (i32, i32) {
    %c0_i32 = arith.constant 0 : i32
    %c0_i32_0 = arith.constant 0 : i32
    %c0_i32_1 = arith.constant 0 : i32
    return %c0_i32, %c0_i32_0 : i32, i32
  }
  func.func @transform_2(%arg0: i32) -> (i32, i32) {
    %c0_i32 = arith.constant 0 : i32
    %c0_i32_0 = arith.constant 0 : i32
    %c0_i32_1 = arith.constant 0 : i32
    return %c0_i32, %c0_i32_0 : i32, i32
  }
  func.func @transform_3(%arg0: i32) -> (i32, i32, i32) {
    %c0_i32 = arith.constant 0 : i32
    %c0_i32_0 = arith.constant 0 : i32
    %c0_i32_1 = arith.constant 0 : i32
    return %arg0, %c0_i32, %c0_i32_0 : i32, i32, i32
  }
}

</mosaic_0001>

<bundles_post_ra>
// kernel: tpu_custom_call.1
= control target key start
LH: loop header
LB: loop body
LE: loop exit
PB: predicated region body
PF: predicated region fallthrough
CT: control target
= control target key end

     0   :  { %8 = vsyncpa [#allocation3], 0  ;;  %s1660_s0 = inlined_call_operand.hbm [shape: f32[2,8,64], index: 0, kind: input, shape index: {}]   ;;  %s1661_s1 = inlined_call_operand.hbm [shape: f32[64,192], index: 1, kind: input, shape index: {}]   ;;  %s1662_s2 = inlined_call_operand.vmem [shape: f32[1,192], index: 2, kind: input, shape index: {}]   ;;  %s1663_s3 = inlined_call_operand.hbm [shape: f32[2,8,192], index: 3, kind: output, shape index: {}]  }
   0x1   :  { %10 = vsyncpa [#allocation3 + $0x1], 0 }
   0x2   :  { %11 = vsyncpa [#allocation6], 0 }
   0x3   :  { %12 = vsyncpa [#allocation4], 0 }
   0x4   :  { %14 = vsyncpa [#allocation4 + $0x1], 0  ;;  %s1318_s12 = smov 0   ;;  %s1320_s13 = smov 0  }
   0x5   :  { %s1322_s14 = smov 0   ;;  %s1324_s15 = smov 0  }
   0x6 LB: > { %s1339_s16 = sadd.s32 4294967295, %s1290_s15   ;;  %s978_s17 = sadd.s32 4294967294, %s1290_s15   ;;  %s1290_s15 = sphi %s1324_s15, %s1683_s15   ;;  %s1286_s14 = sphi %s1322_s14, %s1682_s14   ;;  %s1282_s13 = sphi %s1320_s13, %s1681_s13   ;;  %s1278_s12 = sphi %s1318_s12, %s1680_s12  }
   0x7   : > { %p40_p0 = scmp.ne.s32.totalorder %s1282_s13, %s1278_s12  ;;  %p1664_p1 = scmp.eq.s32.totalorder %s1339_s16, 0 }
   0x8   : > { %p112_p3 = scmp.eq.s32.totalorder %s978_s17, 1  ;;  %p979_p5 = scmp.ge.s32.totalorder %s1290_s15, 1 }
   0x9   : > { %p1348_p4 = por %p1664_p1, %p40_p0  ;;  %p119_p7 = scmp.lt.s32.totalorder %s1290_s15, 3 }
   0xa   : > { %p1353_p6 = por %p112_p3, %p40_p0  ;;  %s1292_s21 = smov [#allocation5]  }
   0xb   : > { %s1667_s18 = scalar_select %p1348_p4, 1, 0 }
   0xc   : > { %s1668_s19 = scalar_select %p1353_p6, 1, 0 }
   0xd   : > { %p1358_p8 = pnand %p979_p5, %p119_p7  ;;  %s131_s22 = sshll.u32 %s1292_s21, 4  ;;  %s1362_s22 = int_to_ptr.vmem [resolvable:$true] %s131_s22 }
   0xe   : > { %s1374_s24 = sadd.s32 1, %s1290_s15   ;;  %s27_s25 = sadd.s32 1, %s1286_s14 }
   0xf   : > { %s1669_s20 = scalar_select %p1358_p8, 1, 0 }
  0x10   : > { %p1110_p9 = pneg %p1358_p8  ;;  %s24_s26 = ssub.s32 %s1290_s15, %s1374_s24 }
  0x11   : > { %s1162_s29 = scalar_lea.hbm %s1661_s1, 2048 }
  0x12   : > { %p1369_p11 = pnand %p1110_p9, %p1664_p1  ;;  %p1163_p12 = scmp.ne.s32.totalorder %s1661_s1, %s1162_s29 }
  0x13   : > { %p1169_p5 = scmp.lt.u32.totalorder %s1162_s29, %s1661_s1 }
  0x14   : > { %p1164_p13 = pneg %p1369_p11 }
  0x16   : > { %p1165_p0 = pnand %p1164_p13, %p1163_p12 }
  0x18   : > { %p1166_p3 = pneg %p1165_p0 }
  0x1a   : > { %p1171_p7 = pnand %p1169_p5, %p1166_p3 }
  0x1c   : > { %1174 = shalt.err (!%p1171_p7)
}
  0x1d   : > { %s1175_s7 = scalar_lea.vmem %s1362_s22, 2048  ;;  %p1183_p2 = scmp.lt.s32.totalorder %s1362_s22, %s1362_s22 }
  0x1e   : > { %p1176_p9 = scmp.ne.s32.totalorder %s1362_s22, %s1175_s7  ;;  %p1184_p6 = scmp.lt.s32.totalorder %s1175_s7, %s1175_s7 }
  0x20   : > { %p1178_p10 = pnand %p1176_p9, %p1164_p13  ;;  %p1185_p4 = por %p1184_p6, %p1183_p2 }
  0x22   : > { %p1179_p1 = pneg %p1178_p10 }
  0x24   : > { %p1186_p8 = pnand %p1185_p4, %p1179_p1 }
  0x26   : > { %1189 = shalt.err (!%p1186_p8)
}
  0x27   : > { %s1293_s8 = smov 256   ;;  %s1294_s9 = smov 16  }
  0x28   : > { %1113 = dma.hbm_to_vmem [thread:$0]  (!%p1369_p11), %s1661_s1, 2048, %s1362_s22, [#allocation6], %s1293_s8, %s1293_s8, %s1294_s9  }
  0x29   : > { %p25_p2 = scmp.eq.s32.totalorder %s24_s26, 0  ;;  %p34_p1 = scmp.ne.s32.totalorder %s1286_s14, %s1282_s13 }
  0x2a   : > { %p35_p4 = scmp.eq.s32.totalorder %s1290_s15, 0  ;;  %p1123_p6 = scmp.lt.s32.totalorder %s1290_s15, 2 }
  0x2b   : > { %s1405_s17 = scalar_select %p25_p2, %s1286_s14, %s27_s25  }
  0x2c   : > { %p36_p8 = por %p35_p4, %p34_p1  ;;  %p1671_p10 = scmp.eq.s32.totalorder %s1339_s16, 1 }
  0x2d   : > { %s148_s27 = sand.u32 1, %s1286_s14   ;;  %s983_s28 = sshll.u32 %s1290_s15, 7 }
  0x2e   : > { %p1409_p12 = por %p1671_p10, %p34_p1  ;;  %s982_s29 = sshll.u32 %s148_s27, 3 }
  0x2f   : > { %s1418_s4 = scalar_lea.hbm %s1660_s0, %s983_s28  ;;  %s152_s22 = scalar_lea.vmem [#allocation2], %s982_s29 }
  0x30   : > { %s159_s25 = sshll.u32 %s152_s22, 4  ;;  %p1420_p11 = pnand %p1123_p6, %p36_p8  ;;  %s1424_s25 = int_to_ptr.vmem [resolvable:$true] %s159_s25 }
  0x31   : > { %s149_s5 = scalar_lea.sflag [#allocation3], %s148_s27  ;;  %s1190_s6 = scalar_lea.hbm %s1418_s4, 128 }
  0x32   : > { %p1191_p13 = scmp.ne.s32.totalorder %s1418_s4, %s1190_s6  ;;  %p1192_p0 = pneg %p1420_p11 }
  0x33   : > { %s1195_s9 = scalar_lea.hbm %s1660_s0, 256  ;;  %p1196_p7 = scmp.lt.u32.totalorder %s1418_s4, %s1660_s0 }
  0x34   : > { %p1193_p3 = pnand %p1192_p0, %p1191_p13  ;;  %p1197_p9 = scmp.lt.u32.totalorder %s1195_s9, %s1190_s6 }
  0x35   : > { %p1199_p1 = scmp.lt.u32.totalorder %s1190_s6, %s1418_s4 }
  0x36   : > { %p1194_p5 = pneg %p1193_p3  ;;  %p1198_p2 = por %p1197_p9, %p1196_p7 }
  0x38   : > { %p1200_p4 = por %p1199_p1, %p1198_p2 }
  0x3a   : > { %p1201_p6 = pnand %p1200_p4, %p1194_p5 }
  0x3c   : > { %1204 = shalt.err (!%p1201_p6)
}
  0x3d   : > { %s1205_s27 = scalar_lea.vmem %s1424_s25, 128  ;;  %s1295_s28 = smov [#allocation2]  }
  0x3e   : > { %p1206_p8 = scmp.ne.s32.totalorder %s1424_s25, %s1205_s27  ;;  %s1210_s29 = sshll.u32 %s1295_s28, 4  ;;  %s1211_s29 = int_to_ptr.vmem [resolvable:$false] %s1210_s29 }
  0x3f   : > { %s1212_s23 = scalar_lea.vmem %s1211_s29, 256  ;;  %p1213_p3 = scmp.lt.s32.totalorder %s1424_s25, %s1211_s29 }
  0x40   : > { %p1208_p10 = pnand %p1206_p8, %p1192_p0  ;;  %p1214_p7 = scmp.lt.s32.totalorder %s1212_s23, %s1205_s27 }
  0x42   : > { %p1209_p13 = pneg %p1208_p10  ;;  %p1215_p9 = por %p1214_p7, %p1213_p3 }
  0x44   : > { %p1216_p2 = pnand %p1215_p9, %p1209_p13 }
  0x46   : > { %1219 = shalt.err (!%p1216_p2)
}
  0x47   : > { %1117 = dma.hbm_to_vmem [thread:$0]  (!%p1420_p11), %s1418_s4, 128, %s1424_s25, %s149_s5  }
  0x48   : > { %p1674_p5 = scmp.ne.s32.totalorder %s1669_s20, 0 }
  0x49   : > { %s1454_s30 = sand.u32 (!%p1674_p5), 1, %s1282_s13   ;;  %p1675_p0 = scmp.ne.s32.totalorder (!%p1674_p5), %s1667_s18, 0 }
  0x4a   : > { %168 = sbr.rel (%p1674_p5) target bundleno = 371 (0x173), region = 32  ;;  %s985_s22 = sshll.u32 (!%p1674_p5), %s1454_s30, 3 }
  0x4b   : > { %s171_s6 = scalar_lea.sflag (!%p1674_p5), [#allocation3], %s1454_s30  ;;  %s1458_s7 = scalar_lea.vmem (!%p1674_p5), [#allocation2], %s985_s22 }
  0x51   : > { %1265 = dma.done.wait (%p1675_p0), %s171_s6, 128  }
  0x52   : > { %1267 = vsyncadd (%p1675_p0), %s171_s6, 4294967168  ;;  %p1676_p11 = scmp.eq.s32.totalorder %s1339_s16, 0 }
  0x54   : > { %1269 = dma.done.wait (%p1676_p11), [#allocation6], 2048   ;;  %p1677_p1 = pmov %p1676_p11 }
  0x55   : > { %v1296_v0 = vmov 0.0   ;;  %v203_v1 = vld [vmem:[#allocation5 + $0x8] sm:$0xff]  ;;  %v205_v2 = vld [vmem:[#allocation5 + $0x18] sm:$0xff]  ;;  %v202_v3 = vld [vmem:[#allocation5] sm:$0xff]  ;;  %vm230_vm0 = vcmask 523264   ;;  %s987_s4 = sshll.u32 %s1454_s30, 4 }
  0x56   : > { %1271 = vsyncadd (%p1677_p1), [#allocation6], 4294965248  ;;  %314 = vmatprep.mubr.f32.mxu1 %v1296_v0  ;;  %663 = vmatprep.mubr.f32.mxu0 %v1296_v0  ;;  %v234_v4 = vand.u32 4294901760, %v203_v1  ;;  %v238_v5 = vand.u32 4294901760, %v205_v2  ;;  %v204_v6 = vld [vmem:[#allocation5 + $0x10] sm:$0xff]  ;;  %v236_v7 = vand.u32 4294901760, %v202_v3 }
  0x57   : > { %v207_v8 = vld [vmem:[#allocation5 + $0x28] sm:$0xff]  ;;  %v209_v9 = vld [vmem:[#allocation5 + $0x38] sm:$0xff]  ;;  %v240_v10 = vand.u32 4294901760, %v204_v6  ;;  %v206_v13 = vld [vmem:[#allocation5 + $0x20] sm:$0xff]  ;;  %s993_s25 = sshll.u32 %s1339_s16, 8  ;;  %s200_s26 = scalar_lea.vmem [#allocation7], %s987_s4 }
  0x58   : > { %v242_v11 = vand.u32 4294901760, %v207_v8  ;;  %v246_v12 = vand.u32 4294901760, %v209_v9  ;;  %v208_v14 = vld [vmem:[#allocation5 + $0x30] sm:$0xff]  ;;  %v211_v15 = vld [vmem:[#allocation5 + $0x48] sm:$0xff]  ;;  %v1470_v16 = vpack.c.bf16 %v238_v5, %v234_v4  ;;  %v1472_v17 = vsub.f32 %v203_v1, %v234_v4  ;;  %v213_v19 = vld [vmem:[#allocation5 + $0x58] sm:$0xff]  ;;  %s898_s5 = sshll.u32 %s200_s26, 4  ;;  %s1615_s10 = scalar_lea.hbm %s1663_s3, %s993_s25  ;;  %s1617_s5 = int_to_ptr.vmem [resolvable:$true] %s898_s5 }
  0x59   : > { %v1474_v18 = vsub.f32 %v205_v2, %v238_v5  ;;  %v210_v20 = vld [vmem:[#allocation5 + $0x40] sm:$0xff]  ;;  %v212_v21 = vld [vmem:[#allocation5 + $0x50] sm:$0xff]  ;;  %v1476_v22 = vpack.c.bf16 %v240_v10, %v236_v7  ;;  %v1478_v23 = vsub.f32 %v202_v3, %v236_v7  ;;  %v1480_v24 = vsub.f32 %v204_v6, %v240_v10  ;;  %v215_v26 = vld [vmem:[#allocation5 + $0x68] sm:$0xff]  ;;  %s884_s11 = scalar_lea.sflag [#allocation4], %s1454_s30  ;;  %s1220_s16 = scalar_lea.vmem %s1617_s5, 256 }
  0x5a   : > { %v1482_v25 = vpack.c.bf16 %v246_v12, %v242_v11  ;;  %v217_v27 = vld [vmem:[#allocation5 + $0x78] sm:$0xff]  ;;  %995 = vmatprep.subr.bf16.mxu1 %v1470_v16  ;;  %1043 = vmatprep.subr.bf16.mxu0 %v1470_v16  ;;  %v1486_v28 = vsub.f32 %v207_v8, %v242_v11  ;;  %v244_v29 = vand.u32 4294901760, %v206_v13  ;;  %v248_v30 = vand.u32 4294901760, %v208_v14  ;;  %v214_v40 = vld [vmem:[#allocation5 + $0x60] sm:$0xff]  ;;  %v216_v41 = vld [vmem:[#allocation5 + $0x70] sm:$0xff]  ;;  %p1221_p4 = scmp.ne.s32.totalorder %s1617_s5, %s1220_s16  ;;  %s1297_s27 = smov [#allocation7]  }
  0x5b   : > { %v250_v31 = vand.u32 4294901760, %v211_v15  ;;  %997 = vmatpush1.bf16.msra.mxu1 %v1476_v22  ;;  %1045 = vmatpush1.bf16.msra.mxu0 %v1476_v22  ;;  %v254_v32 = vand.u32 4294901760, %v213_v19  ;;  %v252_v33 = vand.u32 4294901760, %v210_v20  ;;  %v256_v34 = vand.u32 4294901760, %v212_v21  ;;  %v201_v46 = vld [vmem:[%s1458_s7] sm:$0xff]  ;;  %s1224_s28 = sshll.u32 %s1297_s27, 4  ;;  %s1225_s28 = int_to_ptr.vmem [resolvable:$false] %s1224_s28 }
  0x5c   : > { %v258_v35 = vand.u32 4294901760, %v215_v26  ;;  %999 = vmatprep.subr.bf16.mxu1 %v1482_v25  ;;  %v1491_v36 = vsub.f32 %v209_v9, %v246_v12  ;;  %1047 = vmatprep.subr.bf16.mxu0 %v1482_v25  ;;  %v1494_v37 = vpack.c.bf16 %v248_v30, %v244_v29  ;;  %v1496_v38 = vsub.f32 %v206_v13, %v244_v29  ;;  %p1222_p6 = pnand %p1221_p4, %p1409_p12  ;;  %s1226_s29 = scalar_lea.vmem %s1225_s28, 512 }
  0x5d   : > { %v262_v39 = vand.u32 4294901760, %v217_v27  ;;  %v1498_v42 = vsub.f32 %v208_v14, %v248_v30  ;;  %v1500_v43 = vpack.c.bf16 %v254_v32, %v250_v31  ;;  %v1502_v44 = vsub.f32 %v211_v15, %v250_v31  ;;  %p1227_p10 = scmp.lt.s32.totalorder %s1617_s5, %s1225_s28  ;;  %p1228_p13 = scmp.lt.s32.totalorder %s1226_s29, %s1220_s16 }
  0x5e   : > { %v1504_v45 = vsub.f32 %v213_v19, %v254_v32  ;;  %v1507_v47 = vpack.c.bf16 %v256_v34, %v252_v33  ;;  %v1509_v48 = vsub.f32 %v210_v20, %v252_v33  ;;  %v1511_v49 = vsub.f32 %v212_v21, %v256_v34  ;;  %p1223_p8 = pneg %p1222_p6 }
  0x5f   : > { %v1513_v50 = vpack.c.bf16 %v262_v39, %v258_v35  ;;  %1001 = vmatpush1.bf16.msra.mxu1 %v1494_v37  ;;  %1049 = vmatpush1.bf16.msra.mxu0 %v1494_v37  ;;  %v1517_v51 = vsub.f32 %v215_v26, %v258_v35  ;;  %v260_v52 = vand.u32 4294901760, %v214_v40  ;;  %v264_v53 = vand.u32 4294901760, %v216_v41  ;;  %p1229_p3 = por %p1228_p13, %p1227_p10 }
  0x60   : > { %v328_v54 = vand.u32 4294901760, %v1472_v17  ;;  %1003 = vmatprep.subr.bf16.mxu1 %v1500_v43  ;;  %1051 = vmatprep.subr.bf16.mxu0 %v1500_v43  ;;  %v340_v55 = vand.u32 4294901760, %v1474_v18  ;;  %v232_v56 = vsel %vm230_vm0, %v201_v46, 0  ;;  %v334_v57 = vand.u32 4294901760, %v1478_v23 }
  0x61   : > { %v346_v58 = vand.u32 4294901760, %v1480_v24  ;;  %v1526_v59 = vsub.f32 %v217_v27, %v262_v39  ;;  %v1528_v60 = vpack.c.bf16 %v264_v53, %v260_v52  ;;  %v1530_v61 = vsub.f32 %v214_v40, %v260_v52  ;;  %p1230_p7 = pnand %p1229_p3, %p1223_p8 }
  0x62   : > { %v329_v62 = vsub.f32 %v1472_v17, %v328_v54  ;;  %v1533_v63 = vsub.f32 %v216_v41, %v264_v53  ;;  %v341_v1 = vsub.f32 %v1474_v18, %v340_v55  ;;  %v1536_v2 = vand.u32 4294901760, %v232_v56 }
  0x63   : > { %v335_v3 = vsub.f32 %v1478_v23, %v334_v57  ;;  %1005 = vmatpush1.bf16.msra.mxu1 %v1507_v47  ;;  %1053 = vmatpush1.bf16.msra.mxu0 %v1507_v47  ;;  %v1058_v5 = vpack.c.bf16 %v340_v55, %v328_v54  ;;  %v347_v6 = vsub.f32 %v1480_v24, %v346_v58  ;;  %v352_v7 = vand.u32 4294901760, %v1486_v28 }
  0x64   : > { %v330_v4 = vand.u32 4294901760, %v329_v62  ;;  %1007 = vmatprep.subr.bf16.mxu1 %v1513_v50  ;;  %1055 = vmatprep.subr.bf16.mxu0 %v1513_v50  ;;  %v342_v8 = vand.u32 4294901760, %v341_v1  ;;  %v1546_v9 = vsub.f32 %v232_v56, %v1536_v2  ;;  %v364_v11 = vand.u32 4294901760, %v1491_v36 }
  0x65   : > { %v336_v10 = vand.u32 4294901760, %v335_v3  ;;  %v348_v12 = vand.u32 4294901760, %v347_v6  ;;  %v353_v13 = vsub.f32 %v1486_v28, %v352_v7  ;;  %v358_v14 = vand.u32 4294901760, %v1496_v38 }
  0x66   : > { %v370_v15 = vand.u32 4294901760, %v1498_v42  ;;  %v1010_v19 = vpack.c.bf16 %v342_v8, %v330_v4  ;;  %v317_v20 = vand.u32 4294901760, %v1546_v9  ;;  %v1060_v21 = vpack.c.bf16 %v346_v58, %v334_v57 }
  0x67   : > { %v365_v26 = vsub.f32 %v1491_v36, %v364_v11  ;;  %1009 = vmatpush1.bf16.msra.mxu1 %v1528_v60  ;;  %1057 = vmatpush1.bf16.msra.mxu0 %v1528_v60  ;;  %v354_v27 = vand.u32 4294901760, %v353_v13  ;;  %v1062_v29 = vpack.c.bf16 %v364_v11, %v352_v7  ;;  %v359_v30 = vsub.f32 %v1496_v38, %v358_v14 }
  0x68   : > { %v371_v31 = vsub.f32 %v1498_v42, %v370_v15  ;;  %1011 = vmatprep.subr.bf16.mxu1 %v1010_v19  ;;  %1059 = vmatprep.subr.bf16.mxu0 %v1058_v5  ;;  %v318_v32 = vsub.f32 %v1546_v9, %v317_v20  ;;  %v1012_v33 = vpack.c.bf16 %v348_v12, %v336_v10  ;;  %v376_v35 = vand.u32 4294901760, %v1502_v44 }
  0x69   : > { %v366_v34 = vand.u32 4294901760, %v365_v26  ;;  %v360_v39 = vand.u32 4294901760, %v359_v30  ;;  %v388_v41 = vand.u32 4294901760, %v1504_v45  ;;  %v382_v46 = vand.u32 4294901760, %v1509_v48 }
  0x6a   : > { %v372_v40 = vand.u32 4294901760, %v371_v31  ;;  %v319_v52 = vand.u32 4294901760, %v318_v32  ;;  %667 = vmatmul.mubr.f32.vlgmr.msra.gmra.mrb[0].mxu0 %v317_v20  ;;  %v377_v54 = vsub.f32 %v1502_v44, %v376_v35  ;;  %v394_v55 = vand.u32 4294901760, %v1511_v49 }
  0x6b   : > { %v1014_v53 = vpack.c.bf16 %v366_v34, %v354_v27  ;;  %1061 = vmatpush1.bf16.msra.mxu0 %v1060_v21  ;;  %v1064_v57 = vpack.c.bf16 %v370_v15, %v358_v14  ;;  %v389_v58 = vsub.f32 %v1504_v45, %v388_v41  ;;  %v383_v62 = vsub.f32 %v1509_v48, %v382_v46 }
  0x6c   : > { %v1016_v56 = vpack.c.bf16 %v372_v40, %v360_v39  ;;  %320 = vmatmul.mubr.f32.vlgmr.msra.gmra.mrb[0].mxu1 %v319_v52  ;;  %1063 = vmatprep.subr.bf16.mxu0 %v1062_v29  ;;  %v378_v1 = vand.u32 4294901760, %v377_v54  ;;  %v1066_v3 = vpack.c.bf16 %v388_v41, %v376_v35  ;;  %v395_v4 = vsub.f32 %v1511_v49, %v394_v55 }
  0x6d   : > { %v400_v5 = vand.u32 4294901760, %v1517_v51  ;;  %1013 = vmatpush1.bf16.msra.mxu1 %v1012_v33  ;;  %v390_v6 = vand.u32 4294901760, %v389_v58  ;;  %v384_v7 = vand.u32 4294901760, %v383_v62  ;;  %v412_v8 = vand.u32 4294901760, %v1526_v59  ;;  %470 = vmatprep.mubr.f32.mxu1 %v1296_v0 }
  0x6e   : > { %v406_v10 = vand.u32 4294901760, %v1530_v61  ;;  %1015 = vmatprep.subr.bf16.mxu1 %v1014_v53  ;;  %v396_v11 = vand.u32 4294901760, %v395_v4  ;;  %v418_v13 = vand.u32 4294901760, %v1533_v63  ;;  %785 = vmatprep.mubr.f32.mxu0 %v1296_v0  ;;  %v1068_v15 = vpack.c.bf16 %v394_v55, %v382_v46 }
  0x6f   : > { %v401_v12 = vsub.f32 %v1517_v51, %v400_v5  ;;  %1065 = vmatpush1.bf16.msra.mxu0 %v1064_v57  ;;  %v1018_v14 = vpack.c.bf16 %v390_v6, %v378_v1  ;;  %v413_v19 = vsub.f32 %v1526_v59, %v412_v8  ;;  %v1070_v26 = vpack.c.bf16 %v412_v8, %v400_v5 }
  0x70   : > { %v407_v20 = vsub.f32 %v1530_v61, %v406_v10  ;;  %1067 = vmatprep.subr.bf16.mxu0 %v1066_v3  ;;  %v419_v27 = vsub.f32 %v1533_v63, %v418_v13  ;;  %v1020_v29 = vpack.c.bf16 %v396_v11, %v384_v7  ;;  %v1072_v34 = vpack.c.bf16 %v418_v13, %v406_v10 }
  0x71   : > { %v402_v21 = vand.u32 4294901760, %v401_v12  ;;  %1017 = vmatpush1.bf16.msra.mxu1 %v1016_v56  ;;  %v414_v30 = vand.u32 4294901760, %v413_v19  ;;  %v1026_v39 = vpack.c.bf16 %v1474_v18, %v1472_v17  ;;  %v1028_v40 = vpack.c.bf16 %v1480_v24, %v1478_v23 }
  0x72   : > { %v408_v31 = vand.u32 4294901760, %v407_v20  ;;  %1019 = vmatprep.subr.bf16.mxu1 %v1018_v14  ;;  %v420_v32 = vand.u32 4294901760, %v419_v27  ;;  %v1030_v41 = vpack.c.bf16 %v1491_v36, %v1486_v28  ;;  %v1034_v17 = vpack.c.bf16 %v1504_v45, %v1502_v44  ;;  %v218_v28 = vld [vmem:[%s1662_s2] sm:$0x3] }
  0x73   : > { %1069 = vmatpush1.bf16.msra.mxu0 %v1068_v15  ;;  %v1022_v33 = vpack.c.bf16 %v414_v30, %v402_v21  ;;  %v1036_v18 = vpack.c.bf16 %v1511_v49, %v1509_v48  ;;  %v220_v23 = vlaneseq }
  0x74   : > { %1071 = vmatprep.subr.bf16.mxu0 %v1070_v26  ;;  %v1024_v35 = vpack.c.bf16 %v420_v32, %v408_v31 }
  0x75   : > { %1021 = vmatpush1.bf16.msra.mxu1 %v1020_v29  ;;  %v221_v24 = vshrl.u32 %v220_v23, 7 }
  0x76   : > { %1023 = vmatprep.subr.bf16.mxu1 %v1022_v33 }
  0x77   : > { %1073 = vmatpush1.bf16.msra.mxu0 %v1072_v34  ;;  %v226_v36 = vsub.s32 1, %v221_v24 }
  0x78   : > { %1075 = vmatprep.subr.bf16.mxu0 %v1470_v16  ;;  %v1032_v16 = vpack.c.bf16 %v1498_v42, %v1496_v38 }
  0x79   : > { %1025 = vmatpush1.bf16.msra.mxu1 %v1024_v35  ;;  %v227_v42 = vrot.slane %v218_v28, %v226_v36 }
  0x7a   : > { %1027 = vmatprep.subr.bf16.mxu1 %v1026_v39  ;;  %787 = vmatmul.mubr.f32.vlgmr.msra.gmra.mrb[0].mxu0 %v1536_v2 }
  0x7b   : > { %1077 = vmatpush1.bf16.msra.mxu0 %v1476_v22  ;;  %873 = vmatprep.mubr.f32.mxu0 %v1296_v0  ;;  %v1038_v22 = vpack.c.bf16 %v1526_v59, %v1517_v51 }
  0x7c   : > { %472 = vmatmul.mubr.f32.vlgmr.msra.gmra.mrb[0].mxu1 %v1536_v2  ;;  %1079 = vmatprep.subr.bf16.mxu0 %v1482_v25  ;;  %v222_v25 = vsub.s32 0, %v221_v24 }
  0x7d   : > { %1029 = vmatpush1.bf16.msra.mxu1 %v1028_v40  ;;  %574 = vmatprep.mubr.f32.mxu1 %v1296_v0  ;;  %v1040_v0 = vpack.c.bf16 %v1533_v63, %v1530_v61 }
  0x7e   : > { %1031 = vmatprep.subr.bf16.mxu1 %v1030_v41 }
  0x7f   : > { %1081 = vmatpush1.bf16.msra.mxu0 %v1494_v37  ;;  %v223_v37 = vrot.slane %v218_v28, %v222_v25 }
  0x80   : > { %1083 = vmatprep.subr.bf16.mxu0 %v1500_v43 }
  0x81   : > { %1033 = vmatpush1.bf16.msra.mxu1 %v1032_v16 }
  0x82   : > { %1035 = vmatprep.subr.bf16.mxu1 %v1034_v17 }
  0x83   : > { %1085 = vmatpush1.bf16.msra.mxu0 %v1507_v47 }
  0x84   : > { %1087 = vmatprep.subr.bf16.mxu0 %v1513_v50 }
  0x85   : > { %1037 = vmatpush1.bf16.msra.mxu1 %v1036_v18 }
  0x86   : > { %1039 = vmatprep.subr.bf16.mxu1 %v1038_v22 }
  0x87   : > { %1089 = vmatpush1.bf16.msra.mxu0 %v1528_v60 }
  0x89   : > { %1041 = vmatpush1.bf16.msra.mxu1 %v1040_v0 }
  0x8a   : > { %875 = vmatmul.mubr.f32.vlgmr.msra.gmra.mrb[0].mxu0 %v1536_v2 }
  0x8c   : > { %577 = vmatmul.mubr.f32.vlgmr.msra.gmra.mrb[0].mxu1 %v1546_v9 }
 0x15d   : > { %v876_v38 = vpop.f32.mrb[0].mxu0 }
 0x15e   : > { %v878_v43 = vpop.f32.mrb[1].mxu0 }
 0x15f   : > { %v578_v44 = vpop.f32.mrb[0].mxu1 }
 0x160   : > { %v1090_v45 = vadd.f32 %v578_v44, %v223_v37  ;;  %v580_v47 = vpop.f32.mrb[1].mxu1 }
 0x161   : > { %v1092_v48 = vadd.f32 %v580_v47, %v227_v42 }
 0x162   : > { %v1091_v49 = vadd.f32 %v1090_v45, %v876_v38 }
 0x163   : > { %v1093_v50 = vadd.f32 %v1092_v48, %v878_v43 }
 0x164   : > { %881 = vst [vmem:[%s200_s26] sm:$0xff] %v1091_v49 }
 0x165   : > { %882 = vst.msk [vmem:[%s200_s26 + $0x8] sm:$0xff] %vm230_vm0, %v1093_v50 }
 0x166   : > { %1233 = shalt.err (!%p1230_p7)
}
 0x167   : > { %s1234_s23 = scalar_lea.hbm %s1615_s10, 256  ;;  %s1238_s6 = scalar_lea.hbm %s1663_s3, 512 }
 0x168   : > { %p1235_p9 = scmp.ne.s32.totalorder %s1615_s10, %s1234_s23  ;;  %p1239_p0 = scmp.lt.u32.totalorder %s1615_s10, %s1663_s3 }
 0x169   : > { %p1240_p11 = scmp.lt.u32.totalorder %s1238_s6, %s1234_s23  ;;  %p1242_p4 = scmp.lt.u32.totalorder %s1234_s23, %s1615_s10 }
 0x16a   : > { %p1236_p2 = pnand %p1235_p9, %p1409_p12 }
 0x16b   : > { %p1241_p1 = por %p1240_p11, %p1239_p0 }
 0x16c   : > { %p1237_p5 = pneg %p1236_p2 }
 0x16d   : > { %p1243_p6 = por %p1242_p4, %p1241_p1 }
 0x16f   : > { %p1244_p8 = pnand %p1243_p6, %p1237_p5 }
 0x171   : > { %1247 = shalt.err (!%p1244_p8)
}
 0x172   : > { %1108 = dma.vmem_to_hbm [thread:$0]  (%p1409_p12), %s1617_s5, 256, %s1615_s10, %s884_s11  }
 0x173 PF: > { %s910_s20 = sand.u32 1, %s1278_s12   ;;  %p1678_p10 = scmp.ne.s32.totalorder %s1668_s19, 0 }
 0x174   : > { %p1679_p13 = scmp.ge.s32.totalorder %s1290_s15, 2  ;;  %s911_s4 = scalar_lea.sflag [#allocation4], %s910_s20 }
 0x176   : > { %p1119_p3 = pnand %p1679_p13, %p1678_p10 }
 0x178   : > { %1273 = dma.done.wait (!%p1119_p3), %s911_s4, 256  }
 0x179   : > { %1275 = vsyncadd (!%p1119_p3), %s911_s4, 4294967040  ;;  %p17_p7 = scmp.ge.s32.totalorder %s1374_s24, 4   ;;  %s1680_s12 = smov %s1282_s13 }
 0x17a   : > { %s1681_s13 = smov %s1286_s14  ;;  %s1682_s14 = smov %s1405_s17 }
 0x17b   : > { %s1683_s15 = smov %s1374_s24  ;;  %19 = sbr.rel (!%p17_p7) target bundleno = 6 (0x6), region = 81 }
 0x182   :  { %916 = vsyncpa [#allocation3], 1 }
 0x183   :  { %918 = vsyncpa [#allocation3 + $0x1], 1 }
 0x184   :  { %919 = vsyncpa [#allocation6], 1 }
 0x185   :  { %920 = vsyncpa [#allocation4], 1 }
 0x186   :  { %922 = vsyncpa [#allocation4 + $0x1], 1 }

</bundles_post_ra>
